<compile_context>
chip_gen: v5e
topology: v5e:2x2
jax: 0.10.0
libtpu: 0.0.40
codegen_flags: <defaults>
</compile_context>

<pallas_src>
import functools

import jax
import jax.numpy as jnp
from jax.experimental import pallas as pl
from jax.experimental.pallas import tpu as pltpu


# --------------------------------------------------------------------------- #
# Kernel
# --------------------------------------------------------------------------- #
def _sce_kernel(x_ref, colm_ref, cols_ref, scal_ref, col_m, col_s, acc,
                *, n_rows, masked, col_exp_bf16):
    c = pl.program_id(0)           # row split ("parallel": one per TC on multi-core chips)
    i = pl.program_id(1)           # row block within the split ("arbitrary": carries state)
    inner = pl.num_programs(1)
    tm = x_ref.shape[0]
    n_pad = x_ref.shape[1]

    @pl.when(i == 0)
    def _init():
        col_m[...] = jnp.full(col_m.shape, -jnp.inf, jnp.float32)
        col_s[...] = jnp.zeros(col_s.shape, jnp.float32)
        acc[0] = jnp.float32(0.0)      # running sum of row logsumexp (this split)
        acc[1] = jnp.float32(0.0)      # running trace (this split)

    x = x_ref[...].astype(jnp.float32)                               # (tm, n_pad) f32
    row0 = (c * inner + i) * tm                                      # global row offset
    row_g = jax.lax.broadcasted_iota(jnp.int32, (tm, 1), 0) + row0   # global row ids

    # ---- rows: stable per-row logsumexp, reduced to a scalar immediately ----
    m_r = jnp.max(x, axis=1, keepdims=True)                          # (tm, 1)
    s_r = jnp.sum(jnp.exp(x - m_r), axis=1, keepdims=True)           # (tm, 1)
    row_lse = m_r + jnp.log(s_r)                                     # (tm, 1)
    if masked:
        row_lse = jnp.where(row_g < n_rows, row_lse, 0.0)
    acc[0] += jnp.sum(row_lse)

    # ---- trace: diagonal mask folded into the resident f32 tile ----
    col_g = jax.lax.broadcasted_iota(jnp.int32, (tm, n_pad), 1)
    dmask = col_g == row_g
    if masked:
        dmask = jnp.logical_and(dmask, row_g < n_rows)
    acc[1] += jnp.sum(jnp.where(dmask, x, 0.0))

    # ---- cols: exact online (streaming) max / sum-exp across row blocks ----
    bm = jnp.max(x, axis=0, keepdims=True)                           # (1, n_pad)
    new_m = jnp.maximum(col_m[...], bm)
    if col_exp_bf16:
        # bf16 EUP exp (2x rate on v6e/v7x); argument/result error is tiny
        # relative to bf16 logits quantisation and only affects the scalar loss.
        e = jnp.exp((x - new_m).astype(jnp.bfloat16)).astype(jnp.float32)
    else:
        e = jnp.exp(x - new_m)
    col_s[...] = col_s[...] * jnp.exp(col_m[...] - new_m) + jnp.sum(
        e, axis=0, keepdims=True)
    col_m[...] = new_m

    # ---- emit this split's partial state on its last row block ----
    @pl.when(i == inner - 1)
    def _fin():
        colm_ref[...] = col_m[...].reshape(colm_ref.shape)
        cols_ref[...] = col_s[...].reshape(cols_ref.shape)
        lane = jax.lax.broadcasted_iota(jnp.int32, scal_ref.shape, 2)
        scal_ref[...] = jnp.where(lane == 0, acc[0],
                                  jnp.where(lane == 1, acc[1], 0.0))


# --------------------------------------------------------------------------- #
# Tiling / VMEM heuristics
# --------------------------------------------------------------------------- #
def _vmem_budget_bytes():
    cap = 128 * 1024 * 1024
    try:
        cap = int(pltpu.get_tpu_info().vmem_capacity_bytes)
    except Exception:
        pass
    budget = int(0.35 * cap)                       # ~45 MiB v5e/v6e, ~22 MiB v7x
    limit_cap = min(48 * 1024 * 1024, int(0.625 * cap))   # ~40 MiB cap on v7x
    return budget, limit_cap


def _choose_tiling(n, per_elem, budget):
    """Pick (block_rows, padded_N). Never falls back to a full (N,N) block
    for large N."""
    for tm in (256, 128, 64, 32, 16, 8):
        if n >= 2 * tm and per_elem * tm * n <= budget:
            return tm, ((n + tm - 1) // tm) * tm
    # small matrices: a single full block is fine and always layout-legal
    if per_elem * n * n <= budget or n < 16:
        return n, n
    # last resort for enormous N: smallest legal row block
    return 8, ((n + 7) // 8) * 8


# --------------------------------------------------------------------------- #
# Wrapper
# --------------------------------------------------------------------------- #
def symmetric_cross_entropy(logits, y=None, *, block_rows=None, col_exp_bf16=None):
    """`y` is unused (the module uses gt = arange(N), CLIP assumption)."""
    n = logits.shape[0]
    assert logits.ndim == 2 and logits.shape[1] == n, "logits must be square (N, N)"

    if logits.dtype not in (jnp.float32, jnp.bfloat16, jnp.float16):
        logits = logits.astype(jnp.float32)
    dtype = logits.dtype
    itemsize = jnp.dtype(dtype).itemsize
    if col_exp_bf16 is None:
        col_exp_bf16 = (dtype == jnp.bfloat16)

    budget, limit_cap = _vmem_budget_bytes()
    per_elem = 2 * itemsize + 20          # dbl-buffered input + f32 tile + temps

    if block_rows is not None:
        tm = int(block_rows)
        assert tm >= 1 and (tm % 8 == 0 or tm >= n), "block_rows must be a multiple of 8 (or >= N)"
        n_pad = ((n + tm - 1) // tm) * tm
    else:
        tm, n_pad = _choose_tiling(n, per_elem, budget)

    nblocks = n_pad // tm
    # Split row blocks across (up to) two TensorCores when it divides evenly;
    # on single-core chips the outer axis just runs sequentially (still correct).
    n_splits = 2 if (nblocks >= 2 and nblocks % 2 == 0) else 1
    inner = nblocks // n_splits
    masked = (n_pad != n)

    x = logits
    if masked:
        pad_val = float(jnp.finfo(dtype).min) * 0.5      # very negative, finite
        x = jnp.pad(logits, ((0, n_pad - n), (0, n_pad - n)),
                    constant_values=pad_val)

    est = per_elem * tm * n_pad + 8 * n_pad * 4
    vmem_limit = int(min(limit_cap, max(16 * 1024 * 1024, int(1.4 * est))))

    kern = functools.partial(_sce_kernel, n_rows=n, masked=masked,
                             col_exp_bf16=col_exp_bf16)

    colm, cols, scal = pl.pallas_call(
        kern,
        out_shape=(
            jax.ShapeDtypeStruct((n_splits, 1, n_pad), jnp.float32),   # col running max
            jax.ShapeDtypeStruct((n_splits, 1, n_pad), jnp.float32),   # col running sum-exp
            jax.ShapeDtypeStruct((n_splits, 1, 128), jnp.float32),     # [row-lse sum, trace]
        ),
        grid_spec=pltpu.PrefetchScalarGridSpec(
            num_scalar_prefetch=0,
            grid=(n_splits, inner),
            in_specs=[pl.BlockSpec((tm, n_pad), lambda c, i: (c * inner + i, 0))],
            out_specs=[
                pl.BlockSpec((1, 1, n_pad), lambda c, i: (c, 0, 0)),
                pl.BlockSpec((1, 1, n_pad), lambda c, i: (c, 0, 0)),
                pl.BlockSpec((1, 1, 128), lambda c, i: (c, 0, 0)),
            ],
            scratch_shapes=[
                pltpu.VMEM((1, n_pad), jnp.float32),   # per-split running column max
                pltpu.VMEM((1, n_pad), jnp.float32),   # per-split running column sum-exp
                pltpu.SMEM((2,), jnp.float32),         # per-split [sum(row lse), trace]
            ],
        ),
        compiler_params=pltpu.CompilerParams(
            dimension_semantics=("parallel", "arbitrary"),
            vmem_limit_bytes=vmem_limit,
        ),
    )(x)

    # ---- tiny O(N) epilogue: merge per-split partial states in plain JAX ----
    colm2 = colm[:, 0, :]                                    # (S, n_pad)
    cols2 = cols[:, 0, :]                                    # (S, n_pad)
    m = jnp.max(colm2, axis=0)                               # (n_pad,)
    s = jnp.sum(cols2 * jnp.exp(colm2 - m[None, :]), axis=0)
    col_lse = m + jnp.log(s)
    if masked:
        col_lse = jnp.where(jnp.arange(n_pad) < n, col_lse, 0.0)
    row_lse_sum = jnp.sum(scal[:, 0, 0])
    trace = jnp.sum(scal[:, 0, 1])
    total = row_lse_sum + jnp.sum(col_lse) - 2.0 * trace
    return 0.5 * total / jnp.float32(n)


# --------------------------------------------------------------------------- #
# Reference + tests
# --------------------------------------------------------------------------- #
def _reference(logits):
    lse_r = jax.nn.logsumexp(logits, axis=1)
    lse_c = jax.nn.logsumexp(logits, axis=0)
    diag = jnp.diagonal(logits)
    return jnp.mean(0.5 * (lse_r + lse_c - 2.0 * diag))


if __name__ == "__main__":
    key = jax.random.PRNGKey(0)

    # 1) small square matrix, f32 (single full-block path)
    N = 8
    logits = jax.random.normal(key, (N, N), dtype=jnp.float32)
    y = jnp.arange(N, dtype=jnp.int32)  # unused, matches forward(logits, y)
    loss = symmetric_cross_entropy(logits, y)
    jax.block_until_ready(loss)
    ref = _reference(logits)
    assert jnp.allclose(loss, ref, atol=1e-5, rtol=1e-5), (loss, ref)

    # 2) N not a multiple of the block size: exercises padding + masking + split
    N1 = 200
    logits1 = jax.random.normal(jax.random.PRNGKey(1), (N1, N1), dtype=jnp.float32)
    loss1 = symmetric_cross_entropy(logits1, jnp.arange(N1, dtype=jnp.int32))
    jax.block_until_ready(loss1)
    ref1 = _reference(logits1)
    assert jnp.allclose(loss1, ref1, atol=1e-4, rtol=1e-4), (loss1, ref1)

    # 3) bf16 input, tiled multi-block + two-split path
    N2 = 256
    logits2 = jax.random.normal(jax.random.PRNGKey(2), (N2, N2), dtype=jnp.bfloat16)
    y2 = jnp.arange(N2, dtype=jnp.int32)
    ref2 = _reference(logits2.astype(jnp.float32))

    #   exact f32 column exp
    loss2a = symmetric_cross_entropy(logits2, y2, col_exp_bf16=False)
    jax.block_until_ready(loss2a)
    assert jnp.allclose(loss2a, ref2, atol=1e-4, rtol=1e-4), (loss2a, ref2)

    #   bf16 column exp (default for bf16 logits; EUP relief on v6e/v7x)
    loss2b = symmetric_cross_entropy(logits2, y2)
    jax.block_until_ready(loss2b)
    assert jnp.allclose(loss2b, ref2, atol=3e-2, rtol=2e-2), (loss2b, ref2)

    print("KERNEL_OK")
</pallas_src>

<mosaic_0001>
module attributes {stable_mosaic.version = 11 : i64} {
  func.func @_sce_kernel(%arg0: i32, %arg1: i32, %arg2: memref<8x8xf32, #tpu.memory_space<vmem>>, %arg3: memref<1x1x8xf32, #tpu.memory_space<vmem>>, %arg4: memref<1x1x8xf32, #tpu.memory_space<vmem>>, %arg5: memref<1x1x128xf32, #tpu.memory_space<vmem>>, %arg6: memref<1x8xf32, #tpu.memory_space<vmem>>, %arg7: memref<1x8xf32, #tpu.memory_space<vmem>>, %arg8: memref<2xf32, #tpu.memory_space<smem>>) attributes {dimension_semantics = [#tpu.dimension_semantics<parallel>, #tpu.dimension_semantics<arbitrary>], iteration_bounds = array<i64: 1, 1>, scalar_prefetch = 0 : i64, scratch_operands = 3 : i64, tpu.core_type = #tpu.core_type<tc>, window_params = [{transform_indices = @transform_0, window_bounds = array<i64: 8, 8>}, {transform_indices = @transform_1, window_bounds = array<i64: 1, 1, 8>}, {transform_indices = @transform_2, window_bounds = array<i64: 1, 1, 8>}, {transform_indices = @transform_3, window_bounds = array<i64: 1, 1, 128>}]} {
    %c0_i32 = arith.constant 0 : i32
    %0 = arith.cmpi eq, %arg1, %c0_i32 : i32
    %1 = arith.extui %0 : i1 to i32
    %c0_i32_0 = arith.constant 0 : i32
    %2 = arith.cmpi ne, %1, %c0_i32_0 : i32
    scf.if %2 {
      %cst_23 = arith.constant 0xFF800000 : f32
      %58 = vector.broadcast %cst_23 : f32 to vector<1x8xf32>
      %c0_24 = arith.constant 0 : index
      %c0_25 = arith.constant 0 : index
      %59 = vector.load %arg6[%c0_24, %c0_25] : memref<1x8xf32, #tpu.memory_space<vmem>>, vector<1x8xf32>
      tpu.vector_store %arg6[%c0_24, %c0_25], %58 {strides = array<i32>} : memref<1x8xf32, #tpu.memory_space<vmem>>, vector<1x8xf32>,
      %cst_26 = arith.constant 0.000000e+00 : f32
      %60 = vector.broadcast %cst_26 : f32 to vector<1x8xf32>
      %c0_27 = arith.constant 0 : index
      %c0_28 = arith.constant 0 : index
      %61 = vector.load %arg7[%c0_27, %c0_28] : memref<1x8xf32, #tpu.memory_space<vmem>>, vector<1x8xf32>
      tpu.vector_store %arg7[%c0_27, %c0_28], %60 {strides = array<i32>} : memref<1x8xf32, #tpu.memory_space<vmem>>, vector<1x8xf32>,
      %cst_29 = arith.constant 0.000000e+00 : f32
      %c0_30 = arith.constant 0 : index
      %62 = memref.load %arg8[%c0_30] : memref<2xf32, #tpu.memory_space<smem>>
      memref.store %cst_29, %arg8[%c0_30] : memref<2xf32, #tpu.memory_space<smem>>
      %cst_31 = arith.constant 0.000000e+00 : f32
      %c1_32 = arith.constant 1 : index
      %63 = memref.load %arg8[%c1_32] : memref<2xf32, #tpu.memory_space<smem>>
      memref.store %cst_31, %arg8[%c1_32] : memref<2xf32, #tpu.memory_space<smem>>
    } else {
    }
    %c0 = arith.constant 0 : index
    %c0_1 = arith.constant 0 : index
    %3 = vector.load %arg2[%c0, %c0_1] : memref<8x8xf32, #tpu.memory_space<vmem>>, vector<8x8xf32>
    %c1_i32 = arith.constant 1 : i32
    %4 = arith.muli %arg0, %c1_i32 : i32
    %5 = arith.addi %4, %arg1 : i32
    %c8_i32 = arith.constant 8 : i32
    %6 = arith.muli %5, %c8_i32 : i32
    %7 = tpu.iota {dimensions = array<i32: 0>} : vector<8x1xi32>
    %8 = vector.broadcast %6 : i32 to vector<8x1xi32>
    %9 = arith.addi %7, %8 : vector<8x1xi32>
    %cst = arith.constant dense<0xFF800000> : vector<8xf32>
    %10 = vector.multi_reduction <maximumf>, %3, %cst [1] : vector<8x8xf32> to vector<8xf32>
    %11 = vector.shape_cast %10 : vector<8xf32> to vector<8x1xf32>
    %12 = vector.broadcast %11 : vector<8x1xf32> to vector<8x8xf32>
    %13 = arith.subf %3, %12 : vector<8x8xf32>
    %14 = math.exp %13 : vector<8x8xf32>
    %cst_2 = arith.constant dense<0.000000e+00> : vector<8xf32>
    %15 = vector.multi_reduction <add>, %14, %cst_2 [1] : vector<8x8xf32> to vector<8xf32>
    %16 = vector.shape_cast %15 : vector<8xf32> to vector<8x1xf32>
    %17 = math.log %16 : vector<8x1xf32>
    %18 = arith.addf %11, %17 : vector<8x1xf32>
    %c0_3 = arith.constant 0 : index
    %19 = memref.load %arg8[%c0_3] : memref<2xf32, #tpu.memory_space<smem>>
    %20 = vector.shape_cast %18 : vector<8x1xf32> to vector<1x8x1xf32>
    %cst_4 = arith.constant dense<0.000000e+00> : vector<1xf32>
    %21 = vector.multi_reduction <add>, %20, %cst_4 [1, 2] : vector<1x8x1xf32> to vector<1xf32>
    %22 = vector.shape_cast %21 : vector<1xf32> to vector<1x1x1xf32>
    %23 = vector.extract %22[0, 0, 0] : f32 from vector<1x1x1xf32>
    %24 = arith.addf %19, %23 : f32
    %c0_5 = arith.constant 0 : index
    %25 = memref.load %arg8[%c0_5] : memref<2xf32, #tpu.memory_space<smem>>
    memref.store %24, %arg8[%c0_5] : memref<2xf32, #tpu.memory_space<smem>>
    %26 = tpu.iota {dimensions = array<i32: 1>} : vector<8x8xi32>
    %27 = vector.broadcast %9 : vector<8x1xi32> to vector<8x8xi32>
    %28 = arith.cmpi eq, %26, %27 : vector<8x8xi32>
    %c1 = arith.constant 1 : index
    %29 = memref.load %arg8[%c1] : memref<2xf32, #tpu.memory_space<smem>>
    %cst_6 = arith.constant 0.000000e+00 : f32
    %30 = vector.broadcast %cst_6 : f32 to vector<8x8xf32>
    %31 = arith.select %28, %3, %30 : vector<8x8xi1>, vector<8x8xf32>
    %32 = vector.shape_cast %31 : vector<8x8xf32> to vector<1x8x8xf32>
    %cst_7 = arith.constant dense<0.000000e+00> : vector<1xf32>
    %33 = vector.multi_reduction <add>, %32, %cst_7 [1, 2] : vector<1x8x8xf32> to vector<1xf32>
    %34 = vector.shape_cast %33 : vector<1xf32> to vector<1x1x1xf32>
    %35 = vector.extract %34[0, 0, 0] : f32 from vector<1x1x1xf32>
    %36 = arith.addf %29, %35 : f32
    %c1_8 = arith.constant 1 : index
    %37 = memref.load %arg8[%c1_8] : memref<2xf32, #tpu.memory_space<smem>>
    memref.store %36, %arg8[%c1_8] : memref<2xf32, #tpu.memory_space<smem>>
    %cst_9 = arith.constant dense<0xFF800000> : vector<8xf32>
    %38 = vector.multi_reduction <maximumf>, %3, %cst_9 [0] : vector<8x8xf32> to vector<8xf32>
    %39 = vector.shape_cast %38 : vector<8xf32> to vector<1x8xf32>
    %c0_10 = arith.constant 0 : index
    %c0_11 = arith.constant 0 : index
    %40 = vector.load %arg6[%c0_10, %c0_11] : memref<1x8xf32, #tpu.memory_space<vmem>>, vector<1x8xf32>
    %41 = arith.maximumf %40, %39 : vector<1x8xf32>
    %42 = vector.broadcast %41 : vector<1x8xf32> to vector<8x8xf32>
    %43 = arith.subf %3, %42 : vector<8x8xf32>
    %44 = math.exp %43 : vector<8x8xf32>
    %c0_12 = arith.constant 0 : index
    %c0_13 = arith.constant 0 : index
    %45 = vector.load %arg7[%c0_12, %c0_13] : memref<1x8xf32, #tpu.memory_space<vmem>>, vector<1x8xf32>
    %c0_14 = arith.constant 0 : index
    %c0_15 = arith.constant 0 : index
    %46 = vector.load %arg6[%c0_14, %c0_15] : memref<1x8xf32, #tpu.memory_space<vmem>>, vector<1x8xf32>
    %47 = arith.subf %46, %41 : vector<1x8xf32>
    %48 = math.exp %47 : vector<1x8xf32>
    %49 = arith.mulf %45, %48 : vector<1x8xf32>
    %cst_16 = arith.constant dense<0.000000e+00> : vector<8xf32>
    %50 = vector.multi_reduction <add>, %44, %cst_16 [0] : vector<8x8xf32> to vector<8xf32>
    %51 = vector.shape_cast %50 : vector<8xf32> to vector<1x8xf32>
    %52 = arith.addf %49, %51 : vector<1x8xf32>
    %c0_17 = arith.constant 0 : index
    %c0_18 = arith.constant 0 : index
    %53 = vector.load %arg7[%c0_17, %c0_18] : memref<1x8xf32, #tpu.memory_space<vmem>>, vector<1x8xf32>
    tpu.vector_store %arg7[%c0_17, %c0_18], %52 {strides = array<i32>} : memref<1x8xf32, #tpu.memory_space<vmem>>, vector<1x8xf32>,
    %c0_19 = arith.constant 0 : index
    %c0_20 = arith.constant 0 : index
    %54 = vector.load %arg6[%c0_19, %c0_20] : memref<1x8xf32, #tpu.memory_space<vmem>>, vector<1x8xf32>
    tpu.vector_store %arg6[%c0_19, %c0_20], %41 {strides = array<i32>} : memref<1x8xf32, #tpu.memory_space<vmem>>, vector<1x8xf32>,
    %c0_i32_21 = arith.constant 0 : i32
    %55 = arith.cmpi eq, %arg1, %c0_i32_21 : i32
    %56 = arith.extui %55 : i1 to i32
    %c0_i32_22 = arith.constant 0 : i32
    %57 = arith.cmpi ne, %56, %c0_i32_22 : i32
    scf.if %57 {
      %c0_23 = arith.constant 0 : index
      %c0_24 = arith.constant 0 : index
      %58 = vector.load %arg6[%c0_23, %c0_24] : memref<1x8xf32, #tpu.memory_space<vmem>>, vector<1x8xf32>
      %59 = vector.shape_cast %58 : vector<1x8xf32> to vector<1x1x8xf32>
      %c0_25 = arith.constant 0 : index
      %c0_26 = arith.constant 0 : index
      %c0_27 = arith.constant 0 : index
      %60 = vector.load %arg3[%c0_25, %c0_26, %c0_27] : memref<1x1x8xf32, #tpu.memory_space<vmem>>, vector<1x1x8xf32>
      tpu.vector_store %arg3[%c0_25, %c0_26, %c0_27], %59 {strides = array<i32>} : memref<1x1x8xf32, #tpu.memory_space<vmem>>, vector<1x1x8xf32>,
      %c0_28 = arith.constant 0 : index
      %c0_29 = arith.constant 0 : index
      %61 = vector.load %arg7[%c0_28, %c0_29] : memref<1x8xf32, #tpu.memory_space<vmem>>, vector<1x8xf32>
      %62 = vector.shape_cast %61 : vector<1x8xf32> to vector<1x1x8xf32>
      %c0_30 = arith.constant 0 : index
      %c0_31 = arith.constant 0 : index
      %c0_32 = arith.constant 0 : index
      %63 = vector.load %arg4[%c0_30, %c0_31, %c0_32] : memref<1x1x8xf32, #tpu.memory_space<vmem>>, vector<1x1x8xf32>
      tpu.vector_store %arg4[%c0_30, %c0_31, %c0_32], %62 {strides = array<i32>} : memref<1x1x8xf32, #tpu.memory_space<vmem>>, vector<1x1x8xf32>,
      %64 = tpu.iota {dimensions = array<i32: 2>} : vector<1x1x128xi32>
      %c0_i32_33 = arith.constant 0 : i32
      %65 = vector.broadcast %c0_i32_33 : i32 to vector<1x1x128xi32>
      %66 = arith.cmpi eq, %64, %65 : vector<1x1x128xi32>
      %c0_34 = arith.constant 0 : index
      %67 = memref.load %arg8[%c0_34] : memref<2xf32, #tpu.memory_space<smem>>
      %c1_i32_35 = arith.constant 1 : i32
      %68 = vector.broadcast %c1_i32_35 : i32 to vector<1x1x128xi32>
      %69 = arith.cmpi eq, %64, %68 : vector<1x1x128xi32>
      %c1_36 = arith.constant 1 : index
      %70 = memref.load %arg8[%c1_36] : memref<2xf32, #tpu.memory_space<smem>>
      %cst_37 = arith.constant 0.000000e+00 : f32
      %71 = vector.broadcast %70 : f32 to vector<1x1x128xf32>
      %72 = vector.broadcast %cst_37 : f32 to vector<1x1x128xf32>
      %73 = arith.select %69, %71, %72 : vector<1x1x128xi1>, vector<1x1x128xf32>
      %74 = vector.broadcast %67 : f32 to vector<1x1x128xf32>
      %75 = arith.select %66, %74, %73 : vector<1x1x128xi1>, vector<1x1x128xf32>
      %c0_38 = arith.constant 0 : index
      %c0_39 = arith.constant 0 : index
      %c0_40 = arith.constant 0 : index
      %76 = vector.load %arg5[%c0_38, %c0_39, %c0_40] : memref<1x1x128xf32, #tpu.memory_space<vmem>>, vector<1x1x128xf32>
      tpu.vector_store %arg5[%c0_38, %c0_39, %c0_40], %75 {strides = array<i32>} : memref<1x1x128xf32, #tpu.memory_space<vmem>>, vector<1x1x128xf32>,
    } else {
    }
    return
  }
  func.func @transform_0(%arg0: i32, %arg1: i32) -> (i32, i32) {
    %c1_i32 = arith.constant 1 : i32
    %0 = arith.muli %arg0, %c1_i32 : i32
    %1 = arith.addi %0, %arg1 : i32
    %c0_i32 = arith.constant 0 : i32
    %c0_i32_0 = arith.constant 0 : i32
    return %1, %c0_i32 : i32, i32
  }
  func.func @transform_1(%arg0: i32, %arg1: i32) -> (i32, i32, i32) {
    %c0_i32 = arith.constant 0 : i32
    %c0_i32_0 = arith.constant 0 : i32
    %c0_i32_1 = arith.constant 0 : i32
    return %arg0, %c0_i32, %c0_i32_0 : i32, i32, i32
  }
  func.func @transform_2(%arg0: i32, %arg1: i32) -> (i32, i32, i32) {
    %c0_i32 = arith.constant 0 : i32
    %c0_i32_0 = arith.constant 0 : i32
    %c0_i32_1 = arith.constant 0 : i32
    return %arg0, %c0_i32, %c0_i32_0 : i32, i32, i32
  }
  func.func @transform_3(%arg0: i32, %arg1: i32) -> (i32, i32, i32) {
    %c0_i32 = arith.constant 0 : i32
    %c0_i32_0 = arith.constant 0 : i32
    %c0_i32_1 = arith.constant 0 : i32
    return %arg0, %c0_i32, %c0_i32_0 : i32, i32, i32
  }
}

</mosaic_0001>

<bundles_post_ra>
// kernel: tpu_custom_call.1
= control target key start
LH: loop header
LB: loop body
LE: loop exit
PB: predicated region body
PF: predicated region fallthrough
CT: control target
= control target key end

     0   :  { %9 = vsyncpa [#allocation6], 0  ;;  %s359_s0 = inlined_call_operand.hbm [shape: f32[8,8], index: 0, kind: input, shape index: {}]   ;;  %s360_s1 = inlined_call_operand.hbm [shape: f32[1,1,8], index: 1, kind: output, shape index: {0}]   ;;  %s361_s2 = inlined_call_operand.hbm [shape: f32[1,1,8], index: 2, kind: output, shape index: {1}]   ;;  %s362_s3 = inlined_call_operand.hbm [shape: f32[1,1,128], index: 3, kind: output, shape index: {2}]  }
   0x1   :  { %10 = vsyncpa [#allocation7], 0 }
   0x2   :  { %11 = vsyncpa [#allocation10], 0  ;;  %s20_s14 = sshll.u32 %s359_s0, 4  ;;  %s311_s15 = smov [#allocation5]   ;;  %s21_s14 = int_to_ptr.hbm [resolvable:$true] %s20_s14 }
   0x3   :  { %s22_s16 = sshll.u32 %s311_s15, 4  ;;  %s23_s16 = int_to_ptr.vmem [resolvable:$true] %s22_s16 }
   0x4   :  { %25 = dma.hbm_to_vmem [thread:$0]  %s21_s14, 128, %s23_s16, [#allocation6]  }
   0x5   :  { %305 = dma.done.wait [#allocation6], 128  }
   0x6   :  { %306 = vsyncadd [#allocation6], 4294967168  ;;  %vm35_vm0 = vcmask 57344   ;;  %v312_v0 = vmov -inf   ;;  %v313_v1 = vmov 0.0   ;;  %vm49_vm1 = vcmask 64512  }
   0x7   :  { %36 = vst.msk [vmem:[#allocation2] sm:$0x1] %vm35_vm0, %v312_v0  ;;  %v42_v2 = vld [vmem:[#allocation5] sm:$0xff]  ;;  %v45_v35 = vlaneseq  ;;  %vm63_vm2 = vcmask 7168   ;;  %s314_s0 = smov [#allocation9]   ;;  %s159_s20 = sshll.u32 %s361_s2, 4  ;;  %s160_s20 = int_to_ptr.hbm [resolvable:$true] %s159_s20 }
   0x8   :  { %37 = vst.msk [vmem:[#allocation3] sm:$0x1] %vm35_vm0, %v313_v1  ;;  %v50_v3 = vsel %vm49_vm1, %v42_v2, -inf  ;;  %s157_s17 = sshll.u32 %s314_s0, 4  ;;  %s315_s21 = smov [#allocation8]   ;;  %s158_s17 = int_to_ptr.vmem [resolvable:$true] %s157_s17 }
   0x9   :  { %51 = vmax.xlane.f32.xlu0 %v50_v3  ;;  %v95_v4 = vrot.slane %v50_v3, 4  ;;  %v46_v38 = vshrl.u32 %v45_v35, 7  ;;  %v78_v39 = vand.u32 127, %v45_v35  ;;  %s146_s22 = sshll.u32 %s315_s21, 4  ;;  %s148_s25 = sshll.u32 %s360_s1, 4  ;;  %s147_s22 = int_to_ptr.vmem [resolvable:$true] %s146_s22  ;;  %s149_s25 = int_to_ptr.hbm [resolvable:$true] %s148_s25 }
   0xa   :  { %s316_s26 = smov [#allocation11]   ;;  %s170_s1 = sshll.u32 %s362_s3, 4  ;;  %s171_s1 = int_to_ptr.hbm [resolvable:$true] %s170_s1 }
   0xb   :  { %v96_v5 = vmax.f32 %v50_v3, %v95_v4  ;;  %vm79_vm3 = vcmp.eq.s32.totalorder %v78_v39, %v46_v38  ;;  %s168_s2 = sshll.u32 %s316_s26, 4  ;;  %vm134_vm4 = vcmp.eq.s32.totalorder %v78_v39, 1  ;;  %vm132_vm5 = vcmp.eq.s32.totalorder %v78_v39, 0  ;;  %s169_s2 = int_to_ptr.vmem [resolvable:$true] %s168_s2 }
   0xc   :  { %v81_v42 = vsel %vm79_vm3, %v42_v2, 0.0 }
   0xd   :  { %v97_v6 = vrot.slane %v96_v5, 2  ;;  %v82_v43 = vsel %vm49_vm1, %v81_v42, 0.0 }
   0xe   :  { %v101_v9 = vld [vmem:[#allocation2] sm:$0x1] }
   0xf   :  { %v98_v7 = vmax.f32 %v96_v5, %v97_v6  ;;  %v109_v23 = vld [vmem:[#allocation3] sm:$0x1] }
  0x11   :  { %v99_v8 = vrot.slane %v98_v7, 1 }
  0x13   :  { %v100_v10 = vmax.f32 %v98_v7, %v99_v8 }
  0x15   :  { %v102_v11 = vmax.f32 %v101_v9, %v100_v10 }
  0x17   :  { %v104_v12 = vperm.slane %v102_v11, 0  ;;  %124 = vst.msk [vmem:[#allocation2] sm:$0x1] %vm35_vm0, %v102_v11  ;;  %v110_v15 = vsub.f32 %v101_v9, %v102_v11 }
  0x19   :  { %v106_v13 = vsub.f32 %v42_v2, %v104_v12  ;;  %v111_v16 = vmul.f32 1.442695, %v110_v15 }
  0x1b   :  { %v107_v14 = vmul.f32 1.442695, %v106_v13 }
  0x1d   :  { %201 = vpow2.f32 %v107_v14 }
  0x1e   :  { %203 = vpow2.f32 %v111_v16  ;;  %v128_v59 = vld [vmem:[#allocation2] sm:$0x1] }
  0x1f   :  { %129 = vst.msk [vmem:[#allocation8] sm:$0x1] %vm35_vm0, %v128_v59 }
  0x20   :  { %151 = dma.vmem_to_hbm [thread:$0]  %s147_s22, 16, %s149_s25, [#allocation7]  }
  0x23   :  { %v202_v17 = vpop.eup %201 }
  0x24   :  { %v114_v18 = vsel %vm49_vm1, %v202_v17, 0.0  ;;  %v204_v22 = vpop.eup %203 }
  0x25   :  { %v115_v19 = vrot.slane %v114_v18, 4  ;;  %v113_v25 = vmul.f32 %v204_v22, %v109_v23 }
  0x27   :  { %v116_v20 = vadd.f32 %v115_v19, %v114_v18 }
  0x29   :  { %v117_v21 = vrot.slane %v116_v20, 2 }
  0x2b   :  { %v118_v24 = vadd.f32 %v117_v21, %v116_v20 }
  0x2d   :  { %v119_v26 = vrot.slane %v118_v24, 1 }
  0x2f   :  { %v120_v27 = vadd.f32 %v119_v26, %v118_v24 }
  0x31   :  { %v121_v28 = vadd.f32 %v120_v27, %v113_v25 }
  0x33   :  { %123 = vst.msk [vmem:[#allocation3] sm:$0x1] %vm35_vm0, %v121_v28 }
  0x3a   :  { %v130_v58 = vld [vmem:[#allocation3] sm:$0x1] }
  0x3b   :  { %131 = vst.msk [vmem:[#allocation9] sm:$0x1] %vm35_vm0, %v130_v58 }
  0x3c   :  { %162 = dma.vmem_to_hbm [thread:$0]  %s158_s17, 16, %s160_s20, [#allocation10]  }
  0x7c   :  { %v52_v29 = vpop.xlane.xlu0 %51 }
  0x7d   :  { %v53_v30 = vsub.f32 %v42_v2, %v52_v29 }
  0x7f   :  { %v54_v31 = vmul.f32 1.442695, %v53_v30 }
  0x81   :  { %205 = vpow2.f32 %v54_v31 }
  0x87   :  { %v206_v32 = vpop.eup %205 }
  0x88   :  { %v56_v33 = vsel %vm49_vm1, %v206_v32, 0.0 }
  0x89   :  { %57 = vadd.xlane.f32.xlu0 %v56_v33 }
  0xfc   :  { %v58_v34 = vpop.xlane.xlu0 %57 }
  0xfd   :  { %207 = vlog2.f32 %v58_v34 }
 0x103   :  { %v208_v36 = vpop.eup %207 }
 0x104   :  { %v60_v37 = vmul.f32 0.6931472, %v208_v36 }
 0x106   :  { %v61_v40 = vadd.f32 %v60_v37, %v52_v29 }
 0x108   :  { %v64_v41 = vsel %vm63_vm2, %v61_v40, 0.0 }
 0x109   :  { %65 = vadd.xlane.f32.xlu1 %v64_v41 }
 0x111   :  { %83 = vadd.xlane.f32.xlu1 %v82_v43 }
 0x17c   :  { %v66_v44 = vpop.xlane.xlu1 %65 }
 0x17d   :  { %v67_v45 = vrot.slane %v66_v44, 4 }
 0x17f   :  { %v68_v46 = vadd.f32 %v67_v45, %v66_v44 }
 0x181   :  { %v69_v47 = vrot.slane %v68_v46, 2 }
 0x183   :  { %v70_v48 = vadd.f32 %v69_v47, %v68_v46 }
 0x184   :  { %v84_v49 = vpop.xlane.xlu1 %83 }
 0x185   :  { %v85_v50 = vrot.slane %v84_v49, 4  ;;  %v71_v51 = vrot.slane %v70_v48, 1 }
 0x187   :  { %v86_v52 = vadd.f32 %v85_v50, %v84_v49  ;;  %v72_v53 = vadd.f32 %v71_v51, %v70_v48 }
 0x189   :  { %v87_v54 = vrot.slane %v86_v52, 2  ;;  %191 = vpush %v72_v53 }
 0x18b   :  { %v88_v55 = vadd.f32 %v87_v54, %v86_v52 }
 0x18d   :  { %v89_v56 = vrot.slane %v88_v55, 1 }
 0x18f   :  { %v90_v57 = vadd.f32 %v89_v56, %v88_v55 }
 0x191   :  { %193 = vpush %v90_v57 }
 0x1ba   :  { %s192_s27 = spop %191 }
 0x1bb   :  { %v138_v61 = vstv %s192_s27 }
 0x1c2   :  { %s194_s30 = spop %193 }
 0x1c3   :  { %v136_v60 = vstv %s194_s30 }
 0x1c4   :  { %v137_v62 = vsel %vm134_vm4, %v136_v60, 0.0 }
 0x1c5   :  { %v139_v63 = vsel %vm132_vm5, %v138_v61, %v137_v62 }
 0x1c6   :  { %140 = vst [vmem:[#allocation11] sm:$0x1] %v139_v63 }
 0x1c7   :  { %173 = dma.vmem_to_hbm [thread:$0]  %s169_s2, 16, %s171_s1, [#allocation10]  }
 0x1c8   :  { %307 = dma.done.wait [#allocation7], 16  }
 0x1c9   :  { %308 = vsyncadd [#allocation7], 4294967280 }
 0x1ca   :  { %309 = dma.done.wait [#allocation10], 32  }
 0x1cb   :  { %310 = vsyncadd [#allocation10], 4294967264 }
 0x1cc   :  { %186 = vsyncpa [#allocation6], 1 }
 0x1cd   :  { %187 = vsyncpa [#allocation7], 1 }
 0x1ce   :  { %188 = vsyncpa [#allocation10], 1 }

</bundles_post_ra>
